<compile_context>
chip_gen: v5e
topology: v5e:2x2
jax: 0.10.0
libtpu: 0.0.40
codegen_flags: <defaults>
</compile_context>

<pallas_src>
import jax
import jax.numpy as jnp
from jax import lax
from jax.experimental import pallas as pl
from jax.experimental.pallas import tpu as pltpu

NEG_SLOPE = 0.01  # nn.LeakyReLU default negative_slope


def _round_up(a, b):
    return (a + b - 1) // b * b


def _vmem_limit_bytes():
    """Generation-aware scoped-VMEM limit."""
    try:
        cap = int(pltpu.get_tpu_info().vmem_capacity_bytes)
    except Exception:
        return 32 * 1024 * 1024            # conservative fallback if the query fails
    if cap <= 64 * 1024 * 1024:            # v7x-class: 64 MiB physical -> leave headroom
        return 48 * 1024 * 1024
    return 100 * 1024 * 1024               # v5e / v6e: 128 MiB physical


def _conv3x3_lrelu_kernel(x_ref, w_ref, o_ref, col_ref):
    """One (batch-tile, Cout-tile, Ho-strip) grid step.

    x_ref:   (B, P, HoE, WoE, Cin) bf16.  P = 4 de-interleaved 2x2 pool candidates (or 1 if
             no pooling).  HoE = Ho_pad + 2, WoE = Wo_pad + 2: the +-1 conv halo (zeros)
             is pre-padded by the wrapper, so there is no in-kernel border handling.
    w_ref:   (9*Cin, Cout_tile) bf16, row index = (ky*3 + kx)*Cin + ci.
    o_ref:   (B, strip, Wo_pad, Cout_tile) bf16 output block.
    col_ref: (B, strip, Wo_pad, 9*Cin) bf16 VMEM im2col scratch (fully rewritten per step).
    """
    B, strip, Wo, Ct = o_ref.shape
    P = x_ref.shape[1]
    Cin = x_ref.shape[-1]
    K9 = 9 * Cin

    s = pl.program_id(2)
    r0 = pl.multiple_of(s * strip, strip)          # first ext-pooled row of this strip

    # ---- 2x2/2 max-pool of the strip (+ halo rows): max of P contiguous candidate slabs,
    #      no strided VMEM reads (the wrapper de-interleaved even/odd rows/cols).
    pooled = x_ref[:, 0, pl.ds(r0, strip + 2), :, :]            # (B, strip+2, WoE, Cin)
    for p in range(1, P):
        pooled = jnp.maximum(pooled, x_ref[:, p, pl.ds(r0, strip + 2), :, :])

    # ---- im2col: 9 statically shifted windows of the halo'd strip written at lane
    #      offsets (ky*3+kx)*Cin  ->  one deep-K matmul (K = 9*Cin) per strip.
    for ky in range(3):
        rows = pooled[:, ky:ky + strip, :, :]                   # (B, strip, WoE, Cin)
        for kx in range(3):
            k = ky * 3 + kx
            col_ref[:, :, :, k * Cin:(k + 1) * Cin] = rows[:, :, kx:kx + Wo, :]

    M = B * strip * Wo
    acc = jnp.dot(col_ref[...].reshape(M, K9), w_ref[...],
                  preferred_element_type=jnp.float32)           # f32 accumulation
    y = jnp.maximum(acc, NEG_SLOPE * acc)                       # LeakyReLU(0.01), exact
    o_ref[...] = y.reshape(B, strip, Wo, Ct).astype(o_ref.dtype)


def down_conv_bn_relu(x_nchw, w_oihw, *, down_flag=True, b_tile=1, out_nhwc=False):
    """Forward of DownConvBNReLU.  x_nchw: (N, Cin, H, W); w_oihw: (Cout, Cin, 3, 3)."""
    N, Cin, H, W = x_nchw.shape
    Cout = w_oihw.shape[0]
    assert w_oihw.shape == (Cout, Cin, 3, 3)
    assert N % b_tile == 0

    # bf16 MXU operands (halved HBM/VMEM traffic); accumulation stays f32 in the kernel.
    x = jnp.transpose(x_nchw, (0, 2, 3, 1)).astype(jnp.bfloat16)          # NHWC

    if down_flag:
        Hp, Wp = 2 * ((H + 1) // 2), 2 * ((W + 1) // 2)                    # ceil_mode=True
        Ho, Wo = Hp // 2, Wp // 2
    else:
        Ho, Wo = H, W

    # Lane-dense output channels (unmasked vst); round_up to 128 already yields 256 for
    # any Cout in (128, 256], matching the wide-MXU-N suggestion for v6e/v7x.
    Cout_pad = _round_up(Cout, 128)
    Cout_tile = 256 if Cout_pad % 256 == 0 else 128
    Wo_pad = _round_up(Wo, 8)

    # Ho-strip per grid step: biggest of (32, 16, 8) keeping the f32 accumulator
    # live-set <= 128 KiB (<= half the vreg file) and not overshooting Ho.
    strip = 8
    for cand in (32, 16):
        if cand <= _round_up(Ho, 8) and b_tile * cand * Wo_pad * Cout_tile * 4 <= 128 * 1024:
            strip = cand
            break
    Ho_pad = _round_up(Ho, strip)
    HoE, WoE = Ho_pad + 2, Wo_pad + 2

    if down_flag:
        # ceil-mode padding with -inf (each such pool window still has a real element),
        # then zero padding for strip/8 alignment and the +-1-pooled-pixel conv halo.
        # Padded pooled rows/cols are exactly 0 and double as the conv's zero padding.
        x = jnp.pad(x, ((0, 0), (0, Hp - H), (0, Wp - W), (0, 0)),
                    constant_values=-jnp.inf)
        x = jnp.pad(x, ((0, 0), (2, 2 * Ho_pad - Hp + 2), (2, 2 * Wo_pad - Wp + 2), (0, 0)))
        # De-interleave the 2x2 pool candidates (one-time HBM relayout) so the kernel pool
        # is a max of four contiguous slabs instead of strided sublane reads.
        x = x.reshape(N, HoE, 2, WoE, 2, Cin)
        x = jnp.transpose(x, (0, 2, 4, 1, 3, 5)).reshape(N, 4, HoE, WoE, Cin)
    else:
        # conv-only path: no pooling work; just alignment + 1-pixel zero conv halo.
        x = jnp.pad(x, ((0, 0), (1, Ho_pad - H + 1), (1, Wo_pad - W + 1), (0, 0)))
        x = x.reshape(N, 1, HoE, WoE, Cin)

    P = x.shape[1]

    # Weights: OIHW -> (ky, kx, ci, co) -> (9*Cin, Cout_pad), bf16, zero-padded channels.
    w = jnp.transpose(w_oihw, (2, 3, 1, 0)).astype(jnp.bfloat16).reshape(9 * Cin, Cout)
    w = jnp.pad(w, ((0, 0), (0, Cout_pad - Cout)))

    grid = (N // b_tile, Cout_pad // Cout_tile, Ho_pad // strip)

    out = pl.pallas_call(
        _conv3x3_lrelu_kernel,
        out_shape=jax.ShapeDtypeStruct((N, Ho_pad, Wo_pad, Cout_pad), jnp.bfloat16),
        grid=grid,
        in_specs=[
            pl.BlockSpec((b_tile, P, HoE, WoE, Cin), lambda n, c, s: (n, 0, 0, 0, 0)),
            pl.BlockSpec((9 * Cin, Cout_tile), lambda n, c, s: (0, c)),
        ],
        out_specs=pl.BlockSpec((b_tile, strip, Wo_pad, Cout_tile),
                               lambda n, c, s: (n, s, 0, c)),
        scratch_shapes=[
            pltpu.VMEM((b_tile, strip, Wo_pad, 9 * Cin), jnp.bfloat16),
        ],
        compiler_params=pltpu.CompilerParams(
            dimension_semantics=("parallel", "parallel", "parallel"),
            vmem_limit_bytes=_vmem_limit_bytes(),
        ),
    )(x, w)

    out = out[:, :Ho, :Wo, :Cout]
    if out_nhwc:
        return out                                        # bf16 NHWC, no extra HBM pass
    return jnp.transpose(out, (0, 3, 1, 2)).astype(x_nchw.dtype)          # NCHW


def _reference(x_nchw, w_oihw, *, down_flag=True):
    # Reference on bf16-rounded operands (the kernel feeds the MXU bf16, accumulates f32,
    # and rounds the output to bf16).
    x = x_nchw.astype(jnp.bfloat16).astype(jnp.float32)
    w = w_oihw.astype(jnp.bfloat16).astype(jnp.float32)
    if down_flag:
        _, _, H, W = x.shape
        ph, pw = (-H) % 2, (-W) % 2
        x = jnp.pad(x, ((0, 0), (0, 0), (0, ph), (0, pw)), constant_values=-jnp.inf)
        x = lax.reduce_window(x, -jnp.inf, lax.max, (1, 1, 2, 2), (1, 1, 2, 2), "VALID")
    y = lax.conv_general_dilated(x, w, (1, 1), ((1, 1), (1, 1)),
                                 dimension_numbers=("NCHW", "OIHW", "NCHW"),
                                 precision=lax.Precision.HIGHEST)
    return jnp.maximum(y, NEG_SLOPE * y)


if __name__ == "__main__":
    key = jax.random.PRNGKey(0)
    k_x, k_w = jax.random.split(key)
    N, Cin, Cout, H, W = 2, 4, 8, 16, 16

    x = jax.random.normal(k_x, (N, Cin, H, W), jnp.float32)
    w = jax.random.normal(k_w, (Cout, Cin, 3, 3), jnp.float32) / jnp.sqrt(Cin * 9.0)

    # down_flag=True (module default): pool -> conv -> LeakyReLU
    out = jax.block_until_ready(down_conv_bn_relu(x, w, down_flag=True))
    ref = _reference(x, w, down_flag=True)
    assert out.shape == (N, Cout, H // 2, W // 2), out.shape
    assert jnp.allclose(out, ref, atol=2e-2, rtol=2e-2), float(jnp.max(jnp.abs(out - ref)))

    # odd spatial sizes exercise ceil_mode + alignment padding
    x_odd = jax.random.normal(k_x, (N, Cin, 13, 11), jnp.float32)
    out = jax.block_until_ready(down_conv_bn_relu(x_odd, w, down_flag=True))
    ref = _reference(x_odd, w, down_flag=True)
    assert out.shape == (N, Cout, 7, 6), out.shape
    assert jnp.allclose(out, ref, atol=2e-2, rtol=2e-2), float(jnp.max(jnp.abs(out - ref)))

    # down_flag=False path: conv-only
    out = jax.block_until_ready(down_conv_bn_relu(x, w, down_flag=False))
    ref = _reference(x, w, down_flag=False)
    assert out.shape == (N, Cout, H, W), out.shape
    assert jnp.allclose(out, ref, atol=2e-2, rtol=2e-2), float(jnp.max(jnp.abs(out - ref)))

    print("KERNEL_OK")
</pallas_src>

<mosaic_0001>
module attributes {stable_mosaic.version = 11 : i64} {
  func.func @_conv3x3_lrelu_kernel(%arg0: i32, %arg1: i32, %arg2: i32, %arg3: memref<1x4x10x10x4xbf16, #tpu.memory_space<vmem>>, %arg4: memref<36x128xbf16, #tpu.memory_space<vmem>>, %arg5: memref<1x8x8x128xbf16, #tpu.memory_space<vmem>>, %arg6: memref<1x8x8x36xbf16, #tpu.memory_space<vmem>>) attributes {dimension_semantics = [#tpu.dimension_semantics<parallel>, #tpu.dimension_semantics<parallel>, #tpu.dimension_semantics<parallel>], iteration_bounds = array<i64: 2, 1, 1>, scalar_prefetch = 0 : i64, scratch_operands = 1 : i64, tpu.core_type = #tpu.core_type<tc>, window_params = [{transform_indices = @transform_0, window_bounds = array<i64: 1, 4, 10, 10, 4>}, {transform_indices = @transform_1, window_bounds = array<i64: 36, 128>}, {transform_indices = @transform_2, window_bounds = array<i64: 1, 8, 8, 128>}]} {
    %c8_i32 = arith.constant 8 : i32
    %0 = arith.muli %arg2, %c8_i32 : i32
    %1 = tpu.assume_multiple %0, 8 : i32
    %c0 = arith.constant 0 : index
    %c0_0 = arith.constant 0 : index
    %2 = arith.index_cast %1 : i32 to index
    %c0_1 = arith.constant 0 : index
    %c0_2 = arith.constant 0 : index
    %3 = vector.load %arg3[%c0, %c0_0, %2, %c0_1, %c0_2] : memref<1x4x10x10x4xbf16, #tpu.memory_space<vmem>>, vector<1x1x10x10x4xbf16>
    %4 = vector.shape_cast %3 : vector<1x1x10x10x4xbf16> to vector<1x10x10x4xbf16>
    %c0_3 = arith.constant 0 : index
    %c1 = arith.constant 1 : index
    %5 = arith.index_cast %1 : i32 to index
    %c0_4 = arith.constant 0 : index
    %c0_5 = arith.constant 0 : index
    %6 = vector.load %arg3[%c0_3, %c1, %5, %c0_4, %c0_5] : memref<1x4x10x10x4xbf16, #tpu.memory_space<vmem>>, vector<1x1x10x10x4xbf16>
    %7 = vector.shape_cast %6 : vector<1x1x10x10x4xbf16> to vector<1x10x10x4xbf16>
    %8 = arith.maximumf %4, %7 : vector<1x10x10x4xbf16>
    %c0_6 = arith.constant 0 : index
    %c2 = arith.constant 2 : index
    %9 = arith.index_cast %1 : i32 to index
    %c0_7 = arith.constant 0 : index
    %c0_8 = arith.constant 0 : index
    %10 = vector.load %arg3[%c0_6, %c2, %9, %c0_7, %c0_8] : memref<1x4x10x10x4xbf16, #tpu.memory_space<vmem>>, vector<1x1x10x10x4xbf16>
    %11 = vector.shape_cast %10 : vector<1x1x10x10x4xbf16> to vector<1x10x10x4xbf16>
    %12 = arith.maximumf %8, %11 : vector<1x10x10x4xbf16>
    %c0_9 = arith.constant 0 : index
    %c3 = arith.constant 3 : index
    %13 = arith.index_cast %1 : i32 to index
    %c0_10 = arith.constant 0 : index
    %c0_11 = arith.constant 0 : index
    %14 = vector.load %arg3[%c0_9, %c3, %13, %c0_10, %c0_11] : memref<1x4x10x10x4xbf16, #tpu.memory_space<vmem>>, vector<1x1x10x10x4xbf16>
    %15 = vector.shape_cast %14 : vector<1x1x10x10x4xbf16> to vector<1x10x10x4xbf16>
    %16 = arith.maximumf %12, %15 : vector<1x10x10x4xbf16>
    %17 = vector.extract_strided_slice %16 {offsets = [0, 0, 0, 0], sizes = [1, 8, 10, 4], strides = [1, 1, 1, 1]} : vector<1x10x10x4xbf16> to vector<1x8x10x4xbf16>
    %18 = vector.extract_strided_slice %17 {offsets = [0, 0, 0, 0], sizes = [1, 8, 8, 4], strides = [1, 1, 1, 1]} : vector<1x8x10x4xbf16> to vector<1x8x8x4xbf16>
    %c0_12 = arith.constant 0 : index
    %c0_13 = arith.constant 0 : index
    %c0_14 = arith.constant 0 : index
    %c0_15 = arith.constant 0 : index
    %19 = vector.load %arg6[%c0_12, %c0_13, %c0_14, %c0_15] : memref<1x8x8x36xbf16, #tpu.memory_space<vmem>>, vector<1x8x8x4xbf16>
    tpu.vector_store %arg6[%c0_12, %c0_13, %c0_14, %c0_15], %18 {strides = array<i32>} : memref<1x8x8x36xbf16, #tpu.memory_space<vmem>>, vector<1x8x8x4xbf16>,
    %20 = vector.extract_strided_slice %17 {offsets = [0, 0, 1, 0], sizes = [1, 8, 8, 4], strides = [1, 1, 1, 1]} : vector<1x8x10x4xbf16> to vector<1x8x8x4xbf16>
    %c0_16 = arith.constant 0 : index
    %c0_17 = arith.constant 0 : index
    %c0_18 = arith.constant 0 : index
    %c4 = arith.constant 4 : index
    %21 = vector.load %arg6[%c0_16, %c0_17, %c0_18, %c4] : memref<1x8x8x36xbf16, #tpu.memory_space<vmem>>, vector<1x8x8x4xbf16>
    tpu.vector_store %arg6[%c0_16, %c0_17, %c0_18, %c4], %20 {strides = array<i32>} : memref<1x8x8x36xbf16, #tpu.memory_space<vmem>>, vector<1x8x8x4xbf16>,
    %22 = vector.extract_strided_slice %17 {offsets = [0, 0, 2, 0], sizes = [1, 8, 8, 4], strides = [1, 1, 1, 1]} : vector<1x8x10x4xbf16> to vector<1x8x8x4xbf16>
    %c0_19 = arith.constant 0 : index
    %c0_20 = arith.constant 0 : index
    %c0_21 = arith.constant 0 : index
    %c8 = arith.constant 8 : index
    %23 = vector.load %arg6[%c0_19, %c0_20, %c0_21, %c8] : memref<1x8x8x36xbf16, #tpu.memory_space<vmem>>, vector<1x8x8x4xbf16>
    tpu.vector_store %arg6[%c0_19, %c0_20, %c0_21, %c8], %22 {strides = array<i32>} : memref<1x8x8x36xbf16, #tpu.memory_space<vmem>>, vector<1x8x8x4xbf16>,
    %24 = vector.extract_strided_slice %16 {offsets = [0, 1, 0, 0], sizes = [1, 8, 10, 4], strides = [1, 1, 1, 1]} : vector<1x10x10x4xbf16> to vector<1x8x10x4xbf16>
    %25 = vector.extract_strided_slice %24 {offsets = [0, 0, 0, 0], sizes = [1, 8, 8, 4], strides = [1, 1, 1, 1]} : vector<1x8x10x4xbf16> to vector<1x8x8x4xbf16>
    %c0_22 = arith.constant 0 : index
    %c0_23 = arith.constant 0 : index
    %c0_24 = arith.constant 0 : index
    %c12 = arith.constant 12 : index
    %26 = vector.load %arg6[%c0_22, %c0_23, %c0_24, %c12] : memref<1x8x8x36xbf16, #tpu.memory_space<vmem>>, vector<1x8x8x4xbf16>
    tpu.vector_store %arg6[%c0_22, %c0_23, %c0_24, %c12], %25 {strides = array<i32>} : memref<1x8x8x36xbf16, #tpu.memory_space<vmem>>, vector<1x8x8x4xbf16>,
    %27 = vector.extract_strided_slice %24 {offsets = [0, 0, 1, 0], sizes = [1, 8, 8, 4], strides = [1, 1, 1, 1]} : vector<1x8x10x4xbf16> to vector<1x8x8x4xbf16>
    %c0_25 = arith.constant 0 : index
    %c0_26 = arith.constant 0 : index
    %c0_27 = arith.constant 0 : index
    %c16 = arith.constant 16 : index
    %28 = vector.load %arg6[%c0_25, %c0_26, %c0_27, %c16] : memref<1x8x8x36xbf16, #tpu.memory_space<vmem>>, vector<1x8x8x4xbf16>
    tpu.vector_store %arg6[%c0_25, %c0_26, %c0_27, %c16], %27 {strides = array<i32>} : memref<1x8x8x36xbf16, #tpu.memory_space<vmem>>, vector<1x8x8x4xbf16>,
    %29 = vector.extract_strided_slice %24 {offsets = [0, 0, 2, 0], sizes = [1, 8, 8, 4], strides = [1, 1, 1, 1]} : vector<1x8x10x4xbf16> to vector<1x8x8x4xbf16>
    %c0_28 = arith.constant 0 : index
    %c0_29 = arith.constant 0 : index
    %c0_30 = arith.constant 0 : index
    %c20 = arith.constant 20 : index
    %30 = vector.load %arg6[%c0_28, %c0_29, %c0_30, %c20] : memref<1x8x8x36xbf16, #tpu.memory_space<vmem>>, vector<1x8x8x4xbf16>
    tpu.vector_store %arg6[%c0_28, %c0_29, %c0_30, %c20], %29 {strides = array<i32>} : memref<1x8x8x36xbf16, #tpu.memory_space<vmem>>, vector<1x8x8x4xbf16>,
    %31 = vector.extract_strided_slice %16 {offsets = [0, 2, 0, 0], sizes = [1, 8, 10, 4], strides = [1, 1, 1, 1]} : vector<1x10x10x4xbf16> to vector<1x8x10x4xbf16>
    %32 = vector.extract_strided_slice %31 {offsets = [0, 0, 0, 0], sizes = [1, 8, 8, 4], strides = [1, 1, 1, 1]} : vector<1x8x10x4xbf16> to vector<1x8x8x4xbf16>
    %c0_31 = arith.constant 0 : index
    %c0_32 = arith.constant 0 : index
    %c0_33 = arith.constant 0 : index
    %c24 = arith.constant 24 : index
    %33 = vector.load %arg6[%c0_31, %c0_32, %c0_33, %c24] : memref<1x8x8x36xbf16, #tpu.memory_space<vmem>>, vector<1x8x8x4xbf16>
    tpu.vector_store %arg6[%c0_31, %c0_32, %c0_33, %c24], %32 {strides = array<i32>} : memref<1x8x8x36xbf16, #tpu.memory_space<vmem>>, vector<1x8x8x4xbf16>,
    %34 = vector.extract_strided_slice %31 {offsets = [0, 0, 1, 0], sizes = [1, 8, 8, 4], strides = [1, 1, 1, 1]} : vector<1x8x10x4xbf16> to vector<1x8x8x4xbf16>
    %c0_34 = arith.constant 0 : index
    %c0_35 = arith.constant 0 : index
    %c0_36 = arith.constant 0 : index
    %c28 = arith.constant 28 : index
    %35 = vector.load %arg6[%c0_34, %c0_35, %c0_36, %c28] : memref<1x8x8x36xbf16, #tpu.memory_space<vmem>>, vector<1x8x8x4xbf16>
    tpu.vector_store %arg6[%c0_34, %c0_35, %c0_36, %c28], %34 {strides = array<i32>} : memref<1x8x8x36xbf16, #tpu.memory_space<vmem>>, vector<1x8x8x4xbf16>,
    %36 = vector.extract_strided_slice %31 {offsets = [0, 0, 2, 0], sizes = [1, 8, 8, 4], strides = [1, 1, 1, 1]} : vector<1x8x10x4xbf16> to vector<1x8x8x4xbf16>
    %c0_37 = arith.constant 0 : index
    %c0_38 = arith.constant 0 : index
    %c0_39 = arith.constant 0 : index
    %c32 = arith.constant 32 : index
    %37 = vector.load %arg6[%c0_37, %c0_38, %c0_39, %c32] : memref<1x8x8x36xbf16, #tpu.memory_space<vmem>>, vector<1x8x8x4xbf16>
    tpu.vector_store %arg6[%c0_37, %c0_38, %c0_39, %c32], %36 {strides = array<i32>} : memref<1x8x8x36xbf16, #tpu.memory_space<vmem>>, vector<1x8x8x4xbf16>,
    %c0_40 = arith.constant 0 : index
    %c0_41 = arith.constant 0 : index
    %c0_42 = arith.constant 0 : index
    %c0_43 = arith.constant 0 : index
    %38 = vector.load %arg6[%c0_40, %c0_41, %c0_42, %c0_43] : memref<1x8x8x36xbf16, #tpu.memory_space<vmem>>, vector<1x8x8x36xbf16>
    %39 = vector.shape_cast %38 : vector<1x8x8x36xbf16> to vector<64x36xbf16>
    %c0_44 = arith.constant 0 : index
    %c0_45 = arith.constant 0 : index
    %40 = vector.load %arg4[%c0_44, %c0_45] : memref<36x128xbf16, #tpu.memory_space<vmem>>, vector<36x128xbf16>
    %cst = arith.constant dense<0.000000e+00> : vector<64x128xf32>
    %41 = tpu.matmul %39, %40, %cst {dimension_numbers = #tpu.dot_dimension_numbers<[1], [0], [0], [1], [0, 0, 1, 1], [], []>} : vector<64x36xbf16>, vector<36x128xbf16>, vector<64x128xf32> -> vector<64x128xf32>
    %cst_46 = arith.constant 0.00999999977 : f32
    %42 = vector.broadcast %cst_46 : f32 to vector<64x128xf32>
    %43 = arith.mulf %42, %41 : vector<64x128xf32>
    %44 = arith.maximumf %41, %43 : vector<64x128xf32>
    %45 = vector.shape_cast %44 : vector<64x128xf32> to vector<1x8x8x128xf32>
    %46 = arith.truncf %45 : vector<1x8x8x128xf32> to vector<1x8x8x128xbf16>
    %c0_47 = arith.constant 0 : index
    %c0_48 = arith.constant 0 : index
    %c0_49 = arith.constant 0 : index
    %c0_50 = arith.constant 0 : index
    %47 = vector.load %arg5[%c0_47, %c0_48, %c0_49, %c0_50] : memref<1x8x8x128xbf16, #tpu.memory_space<vmem>>, vector<1x8x8x128xbf16>
    tpu.vector_store %arg5[%c0_47, %c0_48, %c0_49, %c0_50], %46 {strides = array<i32>} : memref<1x8x8x128xbf16, #tpu.memory_space<vmem>>, vector<1x8x8x128xbf16>,
    return
  }
  func.func @transform_0(%arg0: i32, %arg1: i32, %arg2: i32) -> (i32, i32, i32, i32, i32) {
    %c0_i32 = arith.constant 0 : i32
    %c0_i32_0 = arith.constant 0 : i32
    %c0_i32_1 = arith.constant 0 : i32
    %c0_i32_2 = arith.constant 0 : i32
    %c0_i32_3 = arith.constant 0 : i32
    return %arg0, %c0_i32, %c0_i32_0, %c0_i32_1, %c0_i32_2 : i32, i32, i32, i32, i32
  }
  func.func @transform_1(%arg0: i32, %arg1: i32, %arg2: i32) -> (i32, i32) {
    %c0_i32 = arith.constant 0 : i32
    %c0_i32_0 = arith.constant 0 : i32
    return %c0_i32, %arg1 : i32, i32
  }
  func.func @transform_2(%arg0: i32, %arg1: i32, %arg2: i32) -> (i32, i32, i32, i32) {
    %c0_i32 = arith.constant 0 : i32
    %c0_i32_0 = arith.constant 0 : i32
    return %arg0, %arg2, %c0_i32, %arg1 : i32, i32, i32, i32
  }
}

</mosaic_0001>

<bundles_post_ra>
// kernel: tpu_custom_call.1
= control target key start
LH: loop header
LB: loop body
LE: loop exit
PB: predicated region body
PF: predicated region fallthrough
CT: control target
= control target key end

     0   :  { %7 = vsyncpa [#allocation4], 0  ;;  %s2133_s0 = inlined_call_operand.vmem [shape: bf16[2,4,10,10,4], index: 0, kind: input, shape index: {}]   ;;  %s2134_s1 = inlined_call_operand.vmem [shape: bf16[36,128], index: 1, kind: input, shape index: {}]   ;;  %s2135_s2 = inlined_call_operand.hbm [shape: bf16[2,8,8,128], index: 2, kind: output, shape index: {}]  }
   0x1   :  { %9 = vsyncpa [#allocation4 + $0x1], 0  ;;  %s1566_s9 = smov 0   ;;  %s1568_s10 = smov 0  }
   0x2   :  { %s1570_s11 = smov 0   ;;  %s1572_s12 = smov 0  }
   0x3   :  { %s1574_s13 = smov 0   ;;  %s1576_s14 = smov 0  }
   0x4 LB: > { %s1247_s15 = sadd.s32 4294967295, %s1540_s14   ;;  %s1248_s16 = sadd.s32 4294967294, %s1540_s14   ;;  %s1540_s14 = sphi %s1576_s14, %s15_s14   ;;  %s1536_s13 = sphi %s1574_s13, %s2146_s13   ;;  %s1532_s12 = sphi %s1572_s12, %s2145_s12   ;;  %s1528_s11 = sphi %s1570_s11, %s2144_s11   ;;  %s1524_s10 = sphi %s1568_s10, %s2143_s10   ;;  %s1520_s9 = sphi %s1566_s9, %s2142_s9  }
   0x5   : > { %s34_s17 = sadd.s32 1, %s1536_s13  ;;  %s97_s18 = sadd.s32 1, %s1528_s11 }
   0x6   : > { %p36_p0 = scmp.ge.s32.totalorder %s34_s17, 2  ;;  %p107_p1 = scmp.ne.s32.totalorder %s1528_s11, %s1524_s10 }
   0x7   : > { %p108_p2 = scmp.eq.s32.totalorder %s1247_s15, 1  ;;  %p113_p3 = scmp.ne.s32.totalorder %s1524_s10, %s1520_s9 }
   0x8   : > { %s2148_s17 = smov (%p36_p0, %s34_s17), 0  ;;  %p114_p5 = scmp.eq.s32.totalorder %s1248_s16, 1 }
   0x9   : > { %p1606_p4 = por %p108_p2, %p107_p1  ;;  %s90_s20 = ssub.s32 %s1536_s13, %s2148_s17 }
   0xa   : > { %p1252_p6 = scmp.ge.s32.totalorder %s1540_s14, 1  ;;  %p95_p7 = scmp.eq.s32.totalorder %s90_s20, 0 }
   0xb   : > { %p1613_p8 = por %p114_p5, %p113_p3  ;;  %p147_p9 = scmp.lt.s32.totalorder %s1540_s14, 3 }
   0xc   : > { %s1619_s22 = scalar_select %p95_p7, %s1528_s11, %s97_s18  }
   0xd   : > { %p148_p10 = pnand %p1252_p6, %p147_p9 }
   0xe   : > { %p173_p11 = scmp.lt.s32.totalorder (!%p148_p10), %s1532_s12, 1  ;;  %s1542_s28 = smov (!%p148_p10), 12  }
   0xf   : > { %151 = sbr.rel (%p148_p10) target bundleno = 475 (0x1db), region = 28  ;;  %s1543_s29 = smov (!%p148_p10), 8  }
  0x10   : > { %s1544_s30 = smov (!%p148_p10), 4   ;;  %s1545_s3 = smov (!%p148_p10), 16  }
  0x11   : > { %s1546_s4 = smov (!%p148_p10), 20   ;;  %s1547_s5 = smov (!%p148_p10), 24  }
  0x12   : > { %s1548_s6 = smov (!%p148_p10), 28   ;;  %s1549_s7 = smov (!%p148_p10), 32  }
  0x13   : > { %s1482_s16 = scalar_lea.hbm (!%p148_p10), %s2135_s2, 64 }
  0x14   : > { %s174_s23 = scalar_select %p173_p11, %s1532_s12, 1  ;;  %vm690_vm0 = vcmask 1042432   ;;  %vm691_vm1 = vcmask 1046532   ;;  %vm526_vm2 = vsmask.f32 3328  ;;  %vm517_vm6 = vcmask 27648  }
  0x15   : > { %vm1668_vm3 = vmor %vm690_vm0, %vm691_vm1  ;;  %vm527_vm4 = vsmask.f32 7440  ;;  %vm665_vm7 = vcmask 60448   ;;  %vm749_vm8 = vcmask 93248   ;;  %vm783_vm9 = vcmask 126048  }
  0x16   : > { %s1397_s24 = smul.u32 320, %s174_s23  ;;  %vm1706_vm5 = vmor %vm526_vm2, %vm527_vm4  ;;  %vm830_vm10 = vcmask 158848   ;;  %vm868_vm11 = vcmask 191648   ;;  %vm902_vm12 = vcmask 224448   ;;  %vm1057_vm13 = vcmask 1041408  }
  0x17   : > { %vm949_vm14 = vcmask 257248   ;;  %vm987_vm15 = vcmask 290048   ;;  %vm1044_vm0 = vcmask 293888  }
  0x18   : > { %s1626_s27 = scalar_lea.vmem %s2133_s0, %s1397_s24  ;;  %s170_s24 = sand.u32 1, %s1524_s10  }
  0x19   : > { %v202_v0 = vld [vmem:[%s1626_s27 + $0x38] sm:$0xf]  ;;  %v1269_v1 = vld [vmem:[%s1626_s27 + $0x88] sm:$0xf]  ;;  %v200_v7 = vld [vmem:[%s1626_s27 + $0x30] sm:$0xf] }
  0x1a   : > { %v1289_v2 = vld [vmem:[%s1626_s27 + $0xd8] sm:$0xf]  ;;  %v245_v3 = vunpack.c.l.bf16 %v202_v0  ;;  %v265_v4 = vunpack.c.l.bf16 %v1269_v1  ;;  %v1309_v6 = vld [vmem:[%s1626_s27 + $0x128] sm:$0xf]  ;;  %v1267_v8 = vld [vmem:[%s1626_s27 + $0x80] sm:$0xf]  ;;  %v243_v10 = vunpack.c.l.bf16 %v200_v7 }
  0x1b   : > { %v368_v5 = vunpack.c.l.bf16 %v1289_v2  ;;  %v471_v9 = vunpack.c.l.bf16 %v1309_v6  ;;  %v263_v11 = vunpack.c.l.bf16 %v1267_v8  ;;  %v1287_v12 = vld [vmem:[%s1626_s27 + $0xd0] sm:$0xf]  ;;  %v1307_v13 = vld [vmem:[%s1626_s27 + $0x120] sm:$0xf]  ;;  %v203_v14 = vld [vmem:[%s1626_s27 + $0x3c] sm:$0x1] }
  0x1c   : > { %v285_v15 = vmax.f32 %v245_v3, %v265_v4  ;;  %v366_v16 = vunpack.c.l.bf16 %v1287_v12  ;;  %v469_v17 = vunpack.c.l.bf16 %v1307_v13  ;;  %v1270_v18 = vld [vmem:[%s1626_s27 + $0x8c] sm:$0x1]  ;;  %v246_v19 = vunpack.c.l.bf16 %v203_v14  ;;  %v1290_v20 = vld [vmem:[%s1626_s27 + $0xdc] sm:$0x1]  ;;  %v201_v26 = vld [vmem:[%s1626_s27 + $0x34] sm:$0x1] }
  0x1d   : > { %v1310_v21 = vld [vmem:[%s1626_s27 + $0x12c] sm:$0x1]  ;;  %v283_v22 = vmax.f32 %v243_v10, %v263_v11  ;;  %v266_v23 = vunpack.c.l.bf16 %v1270_v18  ;;  %v369_v24 = vunpack.c.l.bf16 %v1290_v20  ;;  %v1268_v27 = vld [vmem:[%s1626_s27 + $0x84] sm:$0x1]  ;;  %v1288_v28 = vld [vmem:[%s1626_s27 + $0xd4] sm:$0x1]  ;;  %v244_v30 = vunpack.c.l.bf16 %v201_v26 }
  0x1e   : > { %v472_v25 = vunpack.c.l.bf16 %v1310_v21  ;;  %v388_v29 = vmax.f32 %v285_v15, %v368_v5  ;;  %v264_v31 = vunpack.c.l.bf16 %v1268_v27  ;;  %v367_v32 = vunpack.c.l.bf16 %v1288_v28  ;;  %v1308_v33 = vld [vmem:[%s1626_s27 + $0x124] sm:$0x1]  ;;  %v196_v34 = vld [vmem:[%s1626_s27 + $0x20] sm:$0xf]  ;;  %v1263_v39 = vld [vmem:[%s1626_s27 + $0x70] sm:$0xf] }
  0x1f   : > { %v197_v35 = vld [vmem:[%s1626_s27 + $0x24] sm:$0x1]  ;;  %v386_v36 = vmax.f32 %v283_v22, %v366_v16  ;;  %v286_v37 = vmax.f32 %v246_v19, %v266_v23  ;;  %v470_v38 = vunpack.c.l.bf16 %v1308_v33  ;;  %v1264_v40 = vld [vmem:[%s1626_s27 + $0x74] sm:$0x1]  ;;  %v239_v41 = vunpack.c.l.bf16 %v196_v34  ;;  %v1283_v42 = vld [vmem:[%s1626_s27 + $0xc0] sm:$0xf] }
  0x20   : > { %v491_v43 = vmax.f32 %v388_v29, %v471_v9  ;;  %v284_v44 = vmax.f32 %v244_v30, %v264_v31  ;;  %v240_v45 = vunpack.c.l.bf16 %v197_v35  ;;  %v259_v46 = vunpack.c.l.bf16 %v1263_v39  ;;  %v1284_v47 = vld [vmem:[%s1626_s27 + $0xc4] sm:$0x1]  ;;  %v1303_v48 = vld [vmem:[%s1626_s27 + $0x110] sm:$0xf]  ;;  %v1304_v53 = vld [vmem:[%s1626_s27 + $0x114] sm:$0x1] }
  0x21   : > { %v489_v49 = vmax.f32 %v386_v36, %v469_v17  ;;  %v389_v50 = vmax.f32 %v286_v37, %v369_v24  ;;  %v260_v51 = vunpack.c.l.bf16 %v1264_v40  ;;  %v362_v52 = vunpack.c.l.bf16 %v1283_v42  ;;  %v198_v22 = vld [vmem:[%s1626_s27 + $0x28] sm:$0xf]  ;;  %v199_v23 = vld [vmem:[%s1626_s27 + $0x2c] sm:$0x1]  ;;  %v1265_v28 = vld [vmem:[%s1626_s27 + $0x78] sm:$0xf] }
  0x22   : > { %v1652_v54 = vpack.c.bf16 %v491_v43, %v491_v43  ;;  %v387_v55 = vmax.f32 %v284_v44, %v367_v32  ;;  %v279_v56 = vmax.f32 %v239_v41, %v259_v46  ;;  %v363_v57 = vunpack.c.l.bf16 %v1284_v47  ;;  %v1266_v30 = vld [vmem:[%s1626_s27 + $0x7c] sm:$0x1]  ;;  %v1285_v31 = vld [vmem:[%s1626_s27 + $0xc8] sm:$0xf]  ;;  %v1286_v36 = vld [vmem:[%s1626_s27 + $0xcc] sm:$0x1] }
  0x23   : > { %v1654_v58 = vpack.c.bf16 %v489_v49, %v489_v49  ;;  %v492_v59 = vmax.f32 %v389_v50, %v472_v25  ;;  %v280_v60 = vmax.f32 %v240_v45, %v260_v51  ;;  %v465_v61 = vunpack.c.l.bf16 %v1303_v48  ;;  %v1305_v37 = vld [vmem:[%s1626_s27 + $0x118] sm:$0xf]  ;;  %v1306_v41 = vld [vmem:[%s1626_s27 + $0x11c] sm:$0x1]  ;;  %v204_v47 = vld [vmem:[%s1626_s27 + $0x40] sm:$0xf] }
  0x24   : > { %771 = vrot.lane.b32.xlu1 %v1652_v54, %s1542_s28  ;;  %v1322_v62 = vrot.slane %v1652_v54, 9  ;;  %v490_v63 = vmax.f32 %v387_v55, %v470_v38  ;;  %v382_v0 = vmax.f32 %v279_v56, %v362_v52  ;;  %v466_v1 = vunpack.c.l.bf16 %v1304_v53  ;;  %v205_v48 = vld [vmem:[%s1626_s27 + $0x44] sm:$0x1]  ;;  %v1271_v53 = vld [vmem:[%s1626_s27 + $0x90] sm:$0xf]  ;;  %s1253_s25 = sshll.u32 %s170_s24, 5 }
  0x25   : > { %769 = vrot.lane.b32.xlu0 %v1654_v58, %s1542_s28  ;;  %v1661_v2 = vpack.c.bf16 %v492_v59, %v492_v59  ;;  %v1321_v3 = vrot.slane %v1654_v58, 9  ;;  %v614_v4 = vshrl.u32 %v1654_v58, 16  ;;  %v617_v5 = vshll.u32 %v1654_v58, 16  ;;  %v1272_v55 = vld [vmem:[%s1626_s27 + $0x94] sm:$0x1]  ;;  %s2087_s26 = scalar_lea.vmem [#allocation3], %s1253_s25 }
  0x26   : > { %v510_v7 = vpack.c.bf16 %v490_v63, %v490_v63  ;;  %v383_v8 = vmax.f32 %v280_v60, %v363_v57  ;;  %v485_v9 = vmax.f32 %v382_v0, %v465_v61  ;;  %v628_v10 = vshrl.u32 %v1652_v54, 16  ;;  %v1291_v61 = vld [vmem:[%s1626_s27 + $0xe0] sm:$0xf]  ;;  %524 = vst.msk [vmem:[#allocation2 + $0x18] sm:$0xf] %vm517_vm6, %v1654_v58 }
  0x27   : > { %v723_v11 = vrot.slane %v1661_v2, 5  ;;  %v616_v12 = vrot.slane %v614_v4, 4  ;;  %v619_v13 = vrot.slane %v617_v5, 5  ;;  %v631_v14 = vshll.u32 %v1652_v54, 16  ;;  %525 = vst.msk [vmem:[#allocation2 + $0x1c] sm:$0xf] %vm517_vm6, %v1652_v54 }
  0x28   : > { %v719_v15 = vrot.slane %v510_v7, 5  ;;  %v486_v16 = vmax.f32 %v383_v8, %v466_v1  ;;  %v1675_v17 = vpack.c.bf16 %v485_v9, %v485_v9  ;;  %v623_v20 = vshll.u32 %v510_v7, 16  ;;  %v1311_v8 = vld [vmem:[%s1626_s27 + $0x130] sm:$0xf] }
  0x29   : > { %v1679_v18 = vsel %vm1668_vm3, %v1322_v62, %v723_v11  ;;  %v620_v19 = vor.u32 %v619_v13, %v616_v12  ;;  %v1681_v21 = vrot.slane %v628_v10, 4  ;;  %v633_v27 = vrot.slane %v631_v14, 5  ;;  %v1292_v62 = vld [vmem:[%s1626_s27 + $0xe4] sm:$0x1] }
  0x2a   : > { %v1687_v24 = vsel %vm1668_vm3, %v1321_v3, %v719_v15  ;;  %v1689_v25 = vpack.c.bf16 %v486_v16, %v486_v16  ;;  %v586_v26 = vshrl.u32 %v1675_v17, 16  ;;  %v589_v29 = vshll.u32 %v1675_v17, 16  ;;  %v1312_v16 = vld [vmem:[%s1626_s27 + $0x134] sm:$0x1]  ;;  %522 = vst.msk [vmem:[#allocation2 + $0x10] sm:$0xf] %vm517_vm6, %v1675_v17 }
  0x2b   : > { %v241_v34 = vunpack.c.l.bf16 %v198_v22  ;;  %v242_v35 = vunpack.c.l.bf16 %v199_v23  ;;  %v621_v38 = vrot.slane %v620_v19, 4  ;;  %v625_v39 = vrot.slane %v623_v20, 5  ;;  %v190_v22 = vld [vmem:[%s1626_s27 + $0x8] sm:$0xf]  ;;  %v1257_v23 = vld [vmem:[%s1626_s27 + $0x58] sm:$0xf] }
  0x2c   : > { %739 = vrot.lane.b32.xlu1 %v1679_v18, %s1543_s29  ;;  %v588_v32 = vrot.slane %v586_v26, 4  ;;  %v595_v33 = vshll.u32 %v1689_v25, 16  ;;  %v591_v40 = vrot.slane %v589_v29, 5  ;;  %v634_v43 = vor.u32 %v633_v27, %v1681_v21 }
  0x2d   : > { %737 = vrot.lane.b32.xlu0 %v1687_v24, %s1543_s29  ;;  %v261_v44 = vunpack.c.l.bf16 %v1265_v28  ;;  %v262_v45 = vunpack.c.l.bf16 %v1266_v30  ;;  %v364_v46 = vunpack.c.l.bf16 %v1285_v31  ;;  %v637_v51 = vshll.u32 %v1661_v2, 16 }
  0x2e   : > { %v592_v49 = vor.u32 %v591_v40, %v588_v32  ;;  %v597_v50 = vrot.slane %v595_v33, 5  ;;  %v365_v52 = vunpack.c.l.bf16 %v1286_v36  ;;  %v467_v59 = vunpack.c.l.bf16 %v1305_v37  ;;  %v1258_v40 = vld [vmem:[%s1626_s27 + $0x5c] sm:$0x1] }
  0x2f   : > { %v281_v56 = vmax.f32 %v241_v34, %v261_v44  ;;  %v282_v57 = vmax.f32 %v242_v35, %v262_v45  ;;  %v468_v60 = vunpack.c.l.bf16 %v1306_v41  ;;  %v1720_v63 = vsel %vm1706_vm5, %v621_v38, %v625_v39  ;;  %v191_v39 = vld [vmem:[%s1626_s27 + $0xc] sm:$0x1]  ;;  %v1277_v41 = vld [vmem:[%s1626_s27 + $0xa8] sm:$0xf] }
  0x30   : > { %v593_v0 = vrot.slane %v592_v49, 4  ;;  %v247_v1 = vunpack.c.l.bf16 %v204_v47  ;;  %v248_v3 = vunpack.c.l.bf16 %v205_v48  ;;  %v267_v5 = vunpack.c.l.bf16 %v1271_v53 }
  0x31   : > { %v384_v4 = vmax.f32 %v281_v56, %v364_v46  ;;  %v385_v2 = vmax.f32 %v282_v57, %v365_v52  ;;  %v268_v7 = vunpack.c.l.bf16 %v1272_v55  ;;  %v370_v10 = vunpack.c.l.bf16 %v1291_v61  ;;  %v1297_v46 = vld [vmem:[%s1626_s27 + $0xf8] sm:$0xf]  ;;  %v1278_v55 = vld [vmem:[%s1626_s27 + $0xac] sm:$0x1]  ;;  %v1255_v57 = vld [vmem:[%s1626_s27 + $0x50] sm:$0xf] }
  0x32   : > { %v1725_v9 = vsel %vm1706_vm5, %v593_v0, %v597_v50  ;;  %v371_v11 = vunpack.c.l.bf16 %v1292_v62  ;;  %v287_v14 = vmax.f32 %v247_v1, %v267_v5  ;;  %v635_v19 = vrot.slane %v634_v43, 4  ;;  %v188_v50 = vld [vmem:[%s1626_s27] sm:$0xf] }
  0x33   : > { %v487_v12 = vmax.f32 %v384_v4, %v467_v59  ;;  %v488_v13 = vmax.f32 %v385_v2, %v468_v60  ;;  %v288_v15 = vmax.f32 %v248_v3, %v268_v7  ;;  %v639_v20 = vrot.slane %v637_v51, 5 }
  0x34   : > { %653 = vrot.lane.b32.xlu1 %v1720_v63, %s1544_s30  ;;  %v473_v21 = vunpack.c.l.bf16 %v1311_v8  ;;  %v1319_v28 = vrot.slane %v1675_v17, 9  ;;  %v390_v29 = vmax.f32 %v287_v14, %v370_v10  ;;  %v711_v30 = vrot.slane %v1689_v25, 5 }
  0x35   : > { %649 = vrot.lane.b32.xlu0 %v1725_v9, %s1544_s30  ;;  %v1734_v26 = vpack.c.bf16 %v487_v12, %v487_v12  ;;  %v1736_v27 = vpack.c.bf16 %v488_v13, %v488_v13  ;;  %v474_v31 = vunpack.c.l.bf16 %v1312_v16  ;;  %v233_v32 = vunpack.c.l.bf16 %v190_v22  ;;  %v1298_v12 = vld [vmem:[%s1626_s27 + $0xfc] sm:$0x1]  ;;  %v1275_v13 = vld [vmem:[%s1626_s27 + $0xa0] sm:$0xf]  ;;  %v1256_v16 = vld [vmem:[%s1626_s27 + $0x54] sm:$0x1] }
  0x36   : > { %v253_v33 = vunpack.c.l.bf16 %v1257_v23  ;;  %v391_v37 = vmax.f32 %v288_v15, %v371_v11  ;;  %v1747_v38 = vsel %vm1706_vm5, %v635_v19, %v639_v20  ;;  %v493_v25 = vmax.f32 %v390_v29, %v473_v21  ;;  %v189_v15 = vld [vmem:[%s1626_s27 + $0x4] sm:$0x1] }
  0x37   : > { %v600_v34 = vshrl.u32 %v1734_v26, 16  ;;  %v603_v35 = vshll.u32 %v1734_v26, 16  ;;  %v609_v36 = vshll.u32 %v1736_v27, 16  ;;  %767 = vrot.lane.b32.xlu2 %v1734_v26, %s1542_s28  ;;  %v234_v48 = vunpack.c.l.bf16 %v191_v39  ;;  %523 = vst.msk [vmem:[#allocation2 + $0x14] sm:$0xf] %vm517_vm6, %v1734_v26 }
  0x38   : > { %v273_v45 = vmax.f32 %v233_v32, %v253_v33  ;;  %v1753_v47 = vpack.c.bf16 %v493_v25, %v493_v25  ;;  %v254_v49 = vunpack.c.l.bf16 %v1258_v40  ;;  %v494_v53 = vmax.f32 %v391_v37, %v474_v31  ;;  %v1295_v33 = vld [vmem:[%s1626_s27 + $0xf0] sm:$0xf] }
  0x39   : > { %v602_v43 = vrot.slane %v600_v34, 4  ;;  %v605_v44 = vrot.slane %v603_v35, 5  ;;  %v611_v52 = vrot.slane %v609_v36, 5  ;;  %v356_v56 = vunpack.c.l.bf16 %v1277_v41  ;;  %v1276_v35 = vld [vmem:[%s1626_s27 + $0xa4] sm:$0x1] }
  0x3a   : > { %v1762_v59 = vsel %vm1668_vm3, %v1319_v28, %v711_v30  ;;  %v793_v60 = vshrl.u32 %v1753_v47, 16  ;;  %v796_v61 = vshll.u32 %v1753_v47, 16  ;;  %v459_v62 = vunpack.c.l.bf16 %v1297_v46  ;;  %v1261_v36 = vld [vmem:[%s1626_s27 + $0x68] sm:$0xf]  ;;  %v1296_v46 = vld [vmem:[%s1626_s27 + $0xf4] sm:$0x1] }
  0x3b   : > { %v606_v51 = vor.u32 %v605_v44, %v602_v43  ;;  %v376_v1 = vmax.f32 %v273_v45, %v356_v56  ;;  %v274_v3 = vmax.f32 %v234_v48, %v254_v49  ;;  %v357_v4 = vunpack.c.l.bf16 %v1278_v55  ;;  %v206_v48 = vld [vmem:[%s1626_s27 + $0x48] sm:$0xf]  ;;  %v207_v55 = vld [vmem:[%s1626_s27 + $0x4c] sm:$0x1] }
  0x3c   : > { %655 = vrot.lane.b32.xlu1 %v1747_v38, %s1544_s30  ;;  %v231_v2 = vunpack.c.l.bf16 %v188_v50  ;;  %v251_v5 = vunpack.c.l.bf16 %v1255_v57  ;;  %v1772_v8 = vpack.c.bf16 %v494_v53, %v494_v53  ;;  %v795_v10 = vrot.slane %v793_v60, 4  ;;  %v1281_v60 = vld [vmem:[%s1626_s27 + $0xb8] sm:$0xf] }
  0x3d   : > { %v607_v0 = vrot.slane %v606_v51, 4  ;;  %v798_v11 = vrot.slane %v796_v61, 5  ;;  %v479_v14 = vmax.f32 %v376_v1, %v459_v62  ;;  %v1320_v19 = vrot.slane %v1734_v26, 9  ;;  %v195_v51 = vld [vmem:[%s1626_s27 + $0x1c] sm:$0x1] }
  0x3e   : > { %v715_v20 = vrot.slane %v1736_v27, 5  ;;  %v377_v21 = vmax.f32 %v274_v3, %v357_v4  ;;  %v460_v22 = vunpack.c.l.bf16 %v1298_v12  ;;  %v271_v23 = vmax.f32 %v231_v2, %v251_v5  ;;  %v194_v27 = vld [vmem:[%s1626_s27 + $0x18] sm:$0xf]  ;;  %v1274_v3 = vld [vmem:[%s1626_s27 + $0x9c] sm:$0x1] }
  0x3f   : > { %v1768_v7 = vsel %vm1706_vm5, %v607_v0, %v611_v52  ;;  %733 = vrot.lane.b32.xlu2 %v1762_v59, %s1543_s29  ;;  %v354_v28 = vunpack.c.l.bf16 %v1275_v13  ;;  %v799_v29 = vor.u32 %v798_v11, %v795_v10  ;;  %v802_v30 = vshll.u32 %v1772_v8, 16  ;;  %v1273_v61 = vld [vmem:[%s1626_s27 + $0x98] sm:$0xf]  ;;  %v1293_v2 = vld [vmem:[%s1626_s27 + $0xe8] sm:$0xf] }
  0x40   : > { %651 = vrot.lane.b32.xlu0 %v1768_v7, %s1544_s30  ;;  %v232_v31 = vunpack.c.l.bf16 %v189_v15  ;;  %v252_v32 = vunpack.c.l.bf16 %v1256_v16  ;;  %v1786_v34 = vpack.c.bf16 %v479_v14, %v479_v14  ;;  %v1793_v37 = vsel %vm1668_vm3, %v1320_v19, %v715_v20  ;;  %v1294_v5 = vld [vmem:[%s1626_s27 + $0xec] sm:$0x1]  ;;  %v1313_v14 = vld [vmem:[%s1626_s27 + $0x138] sm:$0xf] }
  0x41   : > { %v480_v25 = vmax.f32 %v377_v21, %v460_v22  ;;  %v374_v39 = vmax.f32 %v271_v23, %v354_v28  ;;  %v457_v40 = vunpack.c.l.bf16 %v1295_v33  ;;  %v800_v41 = vrot.slane %v799_v29, 4  ;;  %v1262_v11 = vld [vmem:[%s1626_s27 + $0x6c] sm:$0x1]  ;;  %v1314_v21 = vld [vmem:[%s1626_s27 + $0x13c] sm:$0x1] }
  0x42   : > { %v804_v43 = vrot.slane %v802_v30, 5  ;;  %v272_v44 = vmax.f32 %v232_v31, %v252_v32  ;;  %v355_v45 = vunpack.c.l.bf16 %v1276_v35  ;;  %v1323_v49 = vrot.slane %v1753_v47, 9  ;;  %v1301_v23 = vld [vmem:[%s1626_s27 + $0x108] sm:$0xf]  ;;  %v1282_v33 = vld [vmem:[%s1626_s27 + $0xbc] sm:$0x1] }
  0x43   : > { %v544_v50 = vshrl.u32 %v1786_v34, 16  ;;  %v237_v52 = vunpack.c.l.bf16 %v194_v27  ;;  %v257_v53 = vunpack.c.l.bf16 %v1261_v36  ;;  %v842_v56 = vrot.slane %v1772_v8, 5  ;;  %519 = vst.msk [vmem:[#allocation2 + $0x4] sm:$0xf] %vm517_vm6, %v1786_v34 }
  0x44   : > { %816 = vrot.lane.b32.xlu1 %v1720_v63, %s1545_s3  ;;  %v547_v57 = vshll.u32 %v1786_v34, 16  ;;  %v1809_v62 = vpack.c.bf16 %v480_v25, %v480_v25  ;;  %v458_v0 = vunpack.c.l.bf16 %v1296_v46  ;;  %v477_v1 = vmax.f32 %v374_v39, %v457_v40 }
  0x45   : > { %v249_v4 = vunpack.c.l.bf16 %v206_v48  ;;  %v1818_v8 = vsel %vm1706_vm5, %v800_v41, %v804_v43  ;;  %v375_v10 = vmax.f32 %v272_v44, %v355_v45  ;;  %v238_v12 = vunpack.c.l.bf16 %v195_v51  ;;  %v1302_v43 = vld [vmem:[%s1626_s27 + $0x10c] sm:$0x1] }
  0x46   : > { %v250_v13 = vunpack.c.l.bf16 %v207_v55  ;;  %v1822_v15 = vrot.slane %v544_v50, 4  ;;  %v277_v16 = vmax.f32 %v237_v52, %v257_v53  ;;  %v360_v19 = vunpack.c.l.bf16 %v1281_v60 }
  0x47   : > { %735 = vrot.lane.b32.xlu2 %v1793_v37, %s1543_s29  ;;  %v269_v20 = vunpack.c.l.bf16 %v1273_v61  ;;  %v1825_v22 = vrot.slane %v547_v57, 5  ;;  %v270_v28 = vunpack.c.l.bf16 %v1274_v3  ;;  %v372_v29 = vunpack.c.l.bf16 %v1293_v2  ;;  %v1260_v3 = vld [vmem:[%s1626_s27 + $0x64] sm:$0x1] }
  0x48   : > { %814 = vrot.lane.b32.xlu0 %v1768_v7, %s1545_s3  ;;  %v373_v30 = vunpack.c.l.bf16 %v1294_v5  ;;  %v1828_v31 = vpack.c.bf16 %v477_v1, %v477_v1  ;;  %v258_v32 = vunpack.c.l.bf16 %v1262_v11  ;;  %v475_v27 = vunpack.c.l.bf16 %v1313_v14  ;;  %v1259_v1 = vld [vmem:[%s1626_s27 + $0x60] sm:$0xf] }
  0x49   : > { %v289_v35 = vmax.f32 %v249_v4, %v269_v20  ;;  %v478_v36 = vmax.f32 %v375_v10, %v458_v0  ;;  %v290_v25 = vmax.f32 %v250_v13, %v270_v28  ;;  %v476_v39 = vunpack.c.l.bf16 %v1314_v21  ;;  %v193_v0 = vld [vmem:[%s1626_s27 + $0x14] sm:$0x1]  ;;  %v1299_v28 = vld [vmem:[%s1626_s27 + $0x100] sm:$0xf] }
  0x4a   : > { %v1837_v40 = vsel %vm1668_vm3, %v1323_v49, %v842_v56  ;;  %v380_v41 = vmax.f32 %v277_v16, %v360_v19  ;;  %v463_v44 = vunpack.c.l.bf16 %v1301_v23  ;;  %v550_v46 = vor.u32 %v1825_v22, %v1822_v15  ;;  %v192_v56 = vld [vmem:[%s1626_s27 + $0x10] sm:$0xf]  ;;  %v1280_v13 = vld [vmem:[%s1626_s27 + $0xb4] sm:$0x1]  ;;  %518 = vst.msk [vmem:[#allocation2] sm:$0xf] %vm517_vm6, %v1828_v31 }
  0x4b   : > { %v392_v45 = vmax.f32 %v289_v35, %v372_v29  ;;  %v553_v48 = vshll.u32 %v1809_v62, 16  ;;  %v361_v50 = vunpack.c.l.bf16 %v1282_v33  ;;  %v393_v51 = vmax.f32 %v290_v25, %v373_v30  ;;  %v1300_v33 = vld [vmem:[%s1626_s27 + $0x104] sm:$0x1] }
  0x4c   : > { %852 = vrot.lane.b32.xlu1 %v1793_v37, %s1546_s4  ;;  %v530_v52 = vshrl.u32 %v1828_v31, 16  ;;  %v533_v53 = vshll.u32 %v1828_v31, 16  ;;  %v278_v49 = vmax.f32 %v238_v12, %v258_v32  ;;  %v1848_v57 = vpack.c.bf16 %v478_v36, %v478_v36  ;;  %v1279_v12 = vld [vmem:[%s1626_s27 + $0xb0] sm:$0xf]  ;;  %s1364_s27 = sshll.u32 %s1532_s12, 5  ;;  %s1123_s12 = scalar_lea.sflag [#allocation4], %s170_s24 }
  0x4d   : > { %v495_v55 = vmax.f32 %v392_v45, %v475_v27  ;;  %v464_v60 = vunpack.c.l.bf16 %v1302_v43  ;;  %v496_v61 = vmax.f32 %v393_v51, %v476_v39  ;;  %v235_v4 = vunpack.c.l.bf16 %v192_v56 }
  0x4e   : > { %v483_v2 = vmax.f32 %v380_v41, %v463_v44  ;;  %v236_v10 = vunpack.c.l.bf16 %v193_v0  ;;  %v255_v11 = vunpack.c.l.bf16 %v1259_v1  ;;  %v256_v15 = vunpack.c.l.bf16 %v1260_v3 }
  0x4f   : > { %773 = vrot.lane.b32.xlu2 %v1753_v47, %s1542_s28  ;;  %v1853_v5 = vpack.c.bf16 %v495_v55, %v495_v55  ;;  %v1857_v14 = vpack.c.bf16 %v496_v61, %v496_v61  ;;  %v358_v16 = vunpack.c.l.bf16 %v1279_v12  ;;  %v359_v19 = vunpack.c.l.bf16 %v1280_v13 }
  0x50   : > { %820 = vrot.lane.b32.xlu0 %v1818_v8, %s1545_s3  ;;  %v381_v20 = vmax.f32 %v278_v49, %v361_v50  ;;  %v275_v23 = vmax.f32 %v235_v4, %v255_v11  ;;  %v532_v29 = vrot.slane %v530_v52, 4  ;;  %v276_v32 = vmax.f32 %v236_v10, %v256_v15 }
  0x51   : > { %v912_v21 = vshrl.u32 %v1853_v5, 16  ;;  %v915_v22 = vshll.u32 %v1853_v5, 16  ;;  %v921_v30 = vshll.u32 %v1857_v14, 16  ;;  %v461_v35 = vunpack.c.l.bf16 %v1299_v28 }
  0x52   : > { %v535_v27 = vrot.slane %v533_v53, 5  ;;  %v378_v39 = vmax.f32 %v275_v23, %v358_v16  ;;  %v1868_v41 = vpack.c.bf16 %v483_v2, %v483_v2  ;;  %v379_v43 = vmax.f32 %v276_v32, %v359_v19 }
  0x53   : > { %v914_v36 = vrot.slane %v912_v21, 4  ;;  %v917_v25 = vrot.slane %v915_v22, 5  ;;  %v462_v44 = vunpack.c.l.bf16 %v1300_v33  ;;  %v923_v50 = vrot.slane %v921_v30, 5 }
  0x54   : > { %858 = vrot.lane.b32.xlu1 %v1837_v40, %s1546_s4  ;;  %v481_v51 = vmax.f32 %v378_v39, %v461_v35  ;;  %v551_v52 = vrot.slane %v550_v46, 4  ;;  %v555_v49 = vrot.slane %v553_v48, 5  ;;  %v536_v56 = vor.u32 %v535_v27, %v532_v29  ;;  %521 = vst.msk [vmem:[#allocation2 + $0xc] sm:$0xf] %vm517_vm6, %v1868_v41 }
  0x55   : > { %v918_v45 = vor.u32 %v917_v25, %v914_v36  ;;  %v482_v55 = vmax.f32 %v379_v43, %v462_v44  ;;  %v539_v53 = vshll.u32 %v1848_v57, 16  ;;  %v484_v61 = vmax.f32 %v381_v20, %v464_v60 }
  0x56   : > { %v572_v1 = vshrl.u32 %v1868_v41, 16  ;;  %v575_v3 = vshll.u32 %v1868_v41, 16  ;;  %v1875_v4 = vpack.c.bf16 %v481_v51, %v481_v51  ;;  %v537_v60 = vrot.slane %v536_v56, 4 }
  0x57   : > { %818 = vrot.lane.b32.xlu2 %v1747_v38, %s1545_s3  ;;  %v919_v0 = vrot.slane %v918_v45, 4  ;;  %v502_v10 = vpack.c.bf16 %v482_v55, %v482_v55  ;;  %v541_v11 = vrot.slane %v539_v53, 5  ;;  %v504_v12 = vpack.c.bf16 %v484_v61, %v484_v61 }
  0x58   : > { %856 = vrot.lane.b32.xlu0 %v1679_v18, %s1546_s4  ;;  %v558_v46 = vshrl.u32 %v1875_v4, 16  ;;  %v561_v48 = vshll.u32 %v1875_v4, 16  ;;  %v574_v15 = vrot.slane %v572_v1, 4  ;;  %v577_v16 = vrot.slane %v575_v3, 5  ;;  %520 = vst.msk [vmem:[#allocation2 + $0x8] sm:$0xf] %vm517_vm6, %v1875_v4 }
  0x59   : > { %v924_v2 = vsel %vm1706_vm5, %v919_v0, %v923_v50  ;;  %v567_v13 = vshll.u32 %v502_v10, 16  ;;  %v542_v23 = vsel %vm1706_vm5, %v537_v60, %v541_v11  ;;  %v581_v29 = vshll.u32 %v504_v12, 16 }
  0x5a   : > { %v560_v19 = vrot.slane %v558_v46, 4  ;;  %v563_v20 = vrot.slane %v561_v48, 5  ;;  %v578_v28 = vor.u32 %v577_v16, %v574_v15  ;;  %v1317_v36 = vrot.slane %v1875_v4, 9 }
  0x5b   : > { %v569_v22 = vrot.slane %v567_v13, 5  ;;  %v583_v35 = vrot.slane %v581_v29, 5  ;;  %v703_v25 = vrot.slane %v502_v10, 5  ;;  %v699_v39 = vrot.slane %v1809_v62, 5 }
  0x5c   : > { %890 = vrot.lane.b32.xlu1 %v1753_v47, %s1547_s5  ;;  %v1881_v47 = vsel %vm1706_vm5, %v551_v52, %v555_v49  ;;  %v564_v21 = vor.u32 %v563_v20, %v560_v19  ;;  %v579_v33 = vrot.slane %v578_v28, 4  ;;  %v695_v44 = vrot.slane %v1848_v57, 5 }
  0x5d   : > { %v1918_v42 = vsel %vm1668_vm3, %v1317_v36, %v703_v25  ;;  %v707_v45 = vrot.slane %v504_v12, 5  ;;  %v1324_v50 = vrot.slane %v1853_v5, 9  ;;  %v961_v57 = vrot.slane %v1857_v14, 5  ;;  %v1363_v12 = vld [vmem:[%s2134_s1 + $0x8] sm:$0xff] }
  0x5e   : > { %v565_v30 = vrot.slane %v564_v21, 4  ;;  %v1904_v27 = vsel %vm1706_vm5, %v579_v33, %v583_v35 }
  0x5f   : > { %854 = vrot.lane.b32.xlu2 %v1687_v24, %s1546_s4 }
  0x60   : > { %888 = vrot.lane.b32.xlu0 %v1652_v54, %s1547_s5  ;;  %v1897_v32 = vsel %vm1706_vm5, %v565_v30, %v569_v22 }
  0x64   : > { %643 = vrot.lane.b32.xlu1 %v1881_v47, %s1544_s30 }
  0x67   : > { %886 = vrot.lane.b32.xlu2 %v1654_v58, %s1547_s5 }
  0x68   : > { %641 = vrot.lane.b32.xlu0 %v542_v23, %s1544_s30 }
  0x6c   : > { %933 = vrot.lane.b32.xlu1 %v1720_v63, %s1548_s6  ;;  %v1316_v63 = vrot.slane %v1786_v34, 9 }
  0x6e   : > { %v700_v43 = vsel %vm1668_vm3, %v1316_v63, %v699_v39 }
  0x6f   : > { %892 = vrot.lane.b32.xlu2 %v1853_v5, %s1547_s5 }
  0x70   : > { %647 = vrot.lane.b32.xlu0 %v1904_v27, %s1544_s30 }
  0x74   : > { %939 = vrot.lane.b32.xlu1 %v924_v2, %s1548_s6 }
  0x77   : > { %645 = vrot.lane.b32.xlu2 %v1897_v32, %s1544_s30 }
  0x78   : > { %937 = vrot.lane.b32.xlu0 %v1818_v8, %s1548_s6  ;;  %v1315_v8 = vrot.slane %v1828_v31, 9 }
  0x7a   : > { %v696_v62 = vsel %vm1668_vm3, %v1315_v8, %v695_v44 }
  0x7c   : > { %729 = vrot.lane.b32.xlu1 %v1918_v42, %s1543_s29 }
  0x7f   : > { %935 = vrot.lane.b32.xlu2 %v1747_v38, %s1548_s6  ;;  %v1318_v38 = vrot.slane %v1868_v41, 9 }
  0x80   : > { %727 = vrot.lane.b32.xlu0 %v700_v43, %s1543_s29 }
  0x84   : > { %973 = vrot.lane.b32.xlu1 %v1679_v18, %s1549_s7  ;;  %v1948_v18 = vsel %vm1668_vm3, %v1318_v38, %v707_v45 }
  0x87   : > { %725 = vrot.lane.b32.xlu2 %v696_v62, %s1543_s29 }
  0x88   : > { %971 = vrot.lane.b32.xlu0 %v1687_v24, %s1549_s7  ;;  %v962_v24 = vsel %vm1668_vm3, %v1324_v50, %v961_v57 }
  0x8c   : > { %759 = vrot.lane.b32.xlu1 %v1786_v34, %s1542_s28 }
  0x8f   : > { %731 = vrot.lane.b32.xlu2 %v1948_v18, %s1543_s29 }
  0x90   : > { %977 = vrot.lane.b32.xlu0 %v962_v24, %s1549_s7 }
  0x91   : > { %v768_v58 = vpop.permute.xlu2 %767 }
  0x94   : > { %765 = vrot.lane.b32.xlu1 %v1675_v17, %s1542_s28 }
  0x96   : > { %v772_v34 = vpop.permute.xlu1 %771 }
  0x97   : > { %v770_v6 = vpop.permute.xlu0 %769  ;;  %975 = vrot.lane.b32.xlu2 %v1837_v40, %s1549_s7 }
  0x98   : > { %763 = vrot.lane.b32.xlu0 %v1868_v41, %s1542_s28 }
  0x99   : > { %v734_v31 = vpop.permute.xlu2 %733 }
  0x9c   : > { %810 = vrot.lane.b32.xlu1 %v1904_v27, %s1545_s3 }
  0x9e   : > { %v740_v5 = vpop.permute.xlu1 %739 }
  0x9f   : > { %v738_v14 = vpop.permute.xlu0 %737  ;;  %761 = vrot.lane.b32.xlu2 %v1875_v4, %s1542_s28 }
  0xa0   : > { %808 = vrot.lane.b32.xlu0 %v1897_v32, %s1545_s3 }
  0xa1   : > { %v736_v54 = vpop.permute.xlu2 %735 }
  0xa4   : > { %846 = vrot.lane.b32.xlu1 %v1918_v42, %s1546_s4 }
  0xa6   : > { %v654_v40 = vpop.permute.xlu1 %653 }
  0xa7   : > { %672 = vst.msk [vmem:[#allocation2 + $0x18] sm:$0xf] %vm665_vm7, %v654_v40  ;;  %v650_v51 = vpop.permute.xlu0 %649  ;;  %806 = vrot.lane.b32.xlu2 %v1881_v47, %s1545_s3  ;;  %v1008_v47 = vld [vmem:[%s2134_s1 + $0x10] sm:$0x3] }
  0xa8   : > { %756 = vst.msk [vmem:[#allocation2 + $0x18] sm:$0xf] %vm749_vm8, %v738_v14  ;;  %844 = vrot.lane.b32.xlu0 %v700_v43, %s1546_s4  ;;  %v1038_v46 = vunpack.c.l.b16 %v1008_v47 }
  0xa9   : > { %670 = vst.msk [vmem:[#allocation2 + $0x10] sm:$0xf] %vm665_vm7, %v650_v51  ;;  %v774_v52 = vpop.permute.xlu2 %773 }
  0xaa   : > { %754 = vst.msk [vmem:[#allocation2 + $0x10] sm:$0xf] %vm749_vm8, %v734_v31  ;;  %v1041_v60 = vpack.c.b16 %v1038_v46, %v1038_v46 }
  0xab   : > { %788 = vst.msk [vmem:[#allocation2 + $0x10] sm:$0xf] %vm783_vm9, %v768_v58 }
  0xac   : > { %878 = vrot.lane.b32.xlu1 %v1875_v4, %s1547_s5  ;;  %790 = vst.msk [vmem:[#allocation2 + $0x18] sm:$0xf] %vm783_vm9, %v772_v34 }
  0xae   : > { %v656_v49 = vpop.permute.xlu1 %655 }
  0xaf   : > { %673 = vst.msk [vmem:[#allocation2 + $0x1c] sm:$0xf] %vm665_vm7, %v656_v49  ;;  %812 = vrot.lane.b32.xlu2 %v1725_v9, %s1545_s3  ;;  %s1137_s3 = scalar_lea.hbm %s2135_s2, %s1364_s27 }
  0xb0   : > { %757 = vst.msk [vmem:[#allocation2 + $0x1c] sm:$0xf] %vm749_vm8, %v740_v5  ;;  %850 = vrot.lane.b32.xlu0 %v1762_v59, %s1546_s4 }
  0xb1   : > { %791 = vst.msk [vmem:[#allocation2 + $0x1c] sm:$0xf] %vm783_vm9, %v774_v52  ;;  %v819_v55 = vpop.permute.xlu2 %818 }
  0xb2   : > { %v652_v56 = vpop.permute.xlu0 %651  ;;  %837 = vst.msk [vmem:[#allocation2 + $0x18] sm:$0xf] %vm830_vm10, %v819_v55 }
  0xb3   : > { %671 = vst.msk [vmem:[#allocation2 + $0x14] sm:$0xf] %vm665_vm7, %v652_v56 }
  0xb4   : > { %884 = vrot.lane.b32.xlu1 %v1734_v26, %s1547_s5  ;;  %755 = vst.msk [vmem:[#allocation2 + $0x14] sm:$0xf] %vm749_vm8, %v736_v54 }
  0xb5   : > { %789 = vst.msk [vmem:[#allocation2 + $0x14] sm:$0xf] %vm783_vm9, %v770_v6 }
  0xb6   : > { %v817_v53 = vpop.permute.xlu1 %816 }
  0xb7   : > { %836 = vst.msk [vmem:[#allocation2 + $0x14] sm:$0xf] %vm830_vm10, %v817_v53  ;;  %848 = vrot.lane.b32.xlu2 %v1948_v18, %s1546_s4  ;;  %s1138_s4 = sshll.u32 %s2087_s26, 4  ;;  %s1139_s4 = int_to_ptr.vmem [resolvable:$true] %s1138_s4 }
  0xb8   : > { %882 = vrot.lane.b32.xlu0 %v1675_v17, %s1547_s5 }
  0xb9   : > { %v855_v61 = vpop.permute.xlu2 %854 }
  0xba   : > { %v815_v0 = vpop.permute.xlu0 %814  ;;  %874 = vst.msk [vmem:[#allocation2 + $0x14] sm:$0xf] %vm868_vm11, %v855_v61 }
  0xbb   : > { %835 = vst.msk [vmem:[#allocation2 + $0x10] sm:$0xf] %vm830_vm10, %v815_v0 }
  0xbc   : > { %929 = vrot.lane.b32.xlu1 %v1725_v9, %s1548_s6 }
  0xbe   : > { %v853_v26 = vpop.permute.xlu1 %852 }
  0xbf   : > { %873 = vst.msk [vmem:[#allocation2 + $0x10] sm:$0xf] %vm868_vm11, %v853_v26  ;;  %880 = vrot.lane.b32.xlu2 %v1868_v41, %s1547_s5  ;;  %s1140_s5 = sshll.u32 %s1137_s3, 4  ;;  %s1141_s5 = int_to_ptr.hbm [resolvable:$true] %s1140_s5 }
  0xc0   : > { %927 = vrot.lane.b32.xlu0 %v1904_v27, %s1548_s6 }
  0xc1   : > { %v887_v17 = vpop.permute.xlu2 %886 }
  0xc2   : > { %v821_v1 = vpop.permute.xlu0 %820  ;;  %907 = vst.msk [vmem:[#allocation2 + $0x10] sm:$0xf] %vm902_vm12, %v887_v17 }
  0xc3   : > { %838 = vst.msk [vmem:[#allocation2 + $0x1c] sm:$0xf] %vm830_vm10, %v821_v1 }
  0xc4   : > { %965 = vrot.lane.b32.xlu1 %v1948_v18, %s1549_s7 }
  0xc6   : > { %v859_v9 = vpop.permute.xlu1 %858 }
  0xc7   : > { %876 = vst.msk [vmem:[#allocation2 + $0x1c] sm:$0xf] %vm868_vm11, %v859_v9  ;;  %925 = vrot.lane.b32.xlu2 %v1897_v32, %s1548_s6 }
  0xc8   : > { %963 = vrot.lane.b32.xlu0 %v1918_v42, %s1549_s7 }
  0xc9   : > { %v893_v41 = vpop.permute.xlu2 %892 }
  0xca   : > { %v857_v3 = vpop.permute.xlu0 %856  ;;  %910 = vst.msk [vmem:[#allocation2 + $0x1c] sm:$0xf] %vm902_vm12, %v893_v41 }
  0xcb   : > { %875 = vst.msk [vmem:[#allocation2 + $0x18] sm:$0xf] %vm868_vm11, %v857_v3 }
  0xce   : > { %v891_v4 = vpop.permute.xlu1 %890 }
  0xcf   : > { %909 = vst.msk [vmem:[#allocation2 + $0x18] sm:$0xf] %vm902_vm12, %v891_v4  ;;  %931 = vrot.lane.b32.xlu2 %v1768_v7, %s1548_s6  ;;  %v1059_v7 = vsel %vm1057_vm13, %v1041_v60, 0  ;;  %s1476_s6 = sshra.s32 %s1141_s5, 4  ;;  %s1477_s6 = int_to_ptr.hbm [resolvable:$true] %s1476_s6 }
  0xd0   : > { %969 = vrot.lane.b32.xlu0 %v1793_v37, %s1549_s7  ;;  %1389 = vmatpush.bf16.msra.mxu2 %v1059_v7  ;;  %p1483_p1 = scmp.lt.s32.totalorder %s1477_s6, %s2135_s2 }
  0xd1   : > { %v646_v2 = vpop.permute.xlu2 %645  ;;  %1390 = vmatpush.bf16.msra.mxu3 %v1059_v7  ;;  %1066 = vmatpush.bf16.msra.mxu0 %v1059_v7 }
  0xd2   : > { %v889_v10 = vpop.permute.xlu0 %888  ;;  %668 = vst.msk [vmem:[#allocation2 + $0x8] sm:$0xf] %vm665_vm7, %v646_v2  ;;  %1388 = vmatpush.bf16.msra.mxu1 %v1059_v7 }
  0xd3   : > { %908 = vst.msk [vmem:[#allocation2 + $0x14] sm:$0xf] %vm902_vm12, %v889_v10 }
  0xd4   : > { %1392 = vmatpush.bf16.msra.mxu2 %v1363_v12 }
  0xd5   : > { %1393 = vmatpush.bf16.msra.mxu3 %v1363_v12  ;;  %1067 = vmatpush.bf16.msra.mxu0 %v1363_v12 }
  0xd6   : > { %v644_v48 = vpop.permute.xlu1 %643  ;;  %1391 = vmatpush.bf16.msra.mxu1 %v1363_v12 }
  0xd7   : > { %667 = vst.msk [vmem:[#allocation2 + $0x4] sm:$0xf] %vm665_vm7, %v644_v48  ;;  %967 = vrot.lane.b32.xlu2 %v1762_v59, %s1549_s7  ;;  %v1362_v59 = vld [vmem:[%s2134_s1] sm:$0xff]  ;;  %s1478_s7 = scalar_lea.hbm %s1477_s6, 32 }
  0xd8   : > { %1395 = vmatpush.bf16.msra.mxu2 %v1362_v59  ;;  %p1479_p12 = scmp.ne.s32.totalorder %s1477_s6, %s1478_s7  ;;  %p1484_p2 = scmp.lt.s32.totalorder %s1482_s16, %s1478_s7 }
  0xd9   : > { %v936_v37 = vpop.permute.xlu2 %935  ;;  %1396 = vmatpush.bf16.msra.mxu3 %v1362_v59  ;;  %1068 = vmatpush.bf16.msra.mxu0 %v1362_v59 }
  0xda   : > { %v642_v11 = vpop.permute.xlu0 %641  ;;  %955 = vst.msk [vmem:[#allocation2 + $0x14] sm:$0xf] %vm949_vm14, %v936_v37  ;;  %1394 = vmatpush.bf16.msra.mxu1 %v1362_v59  ;;  %p1480_p13 = pnand %p1479_p12, %p1606_p4  ;;  %p1485_p3 = por %p1484_p2, %p1483_p1 }
  0xdb   : > { %666 = vst.msk [vmem:[#allocation2] sm:$0xf] %vm665_vm7, %v642_v11 }
  0xdc   : > { %p1481_p0 = pneg %p1480_p13 }
  0xde   : > { %v934_v13 = vpop.permute.xlu1 %933  ;;  %p1486_p5 = pnand %p1485_p3, %p1481_p0 }
  0xdf   : > { %954 = vst.msk [vmem:[#allocation2 + $0x10] sm:$0xf] %vm949_vm14, %v934_v13 }
  0xe1   : > { %v726_v15 = vpop.permute.xlu2 %725 }
  0xe2   : > { %v648_v16 = vpop.permute.xlu0 %647  ;;  %750 = vst.msk [vmem:[#allocation2] sm:$0xf] %vm749_vm8, %v726_v15 }
  0xe3   : > { %669 = vst.msk [vmem:[#allocation2 + $0xc] sm:$0xf] %vm665_vm7, %v648_v16 }
  0xe6   : > { %v940_v19 = vpop.permute.xlu1 %939 }
  0xe7   : > { %957 = vst.msk [vmem:[#allocation2 + $0x1c] sm:$0xf] %vm949_vm14, %v940_v19 }
  0xe9   : > { %v732_v20 = vpop.permute.xlu2 %731 }
  0xea   : > { %v938_v21 = vpop.permute.xlu0 %937  ;;  %753 = vst.msk [vmem:[#allocation2 + $0xc] sm:$0xf] %vm749_vm8, %v732_v20 }
  0xeb   : > { %956 = vst.msk [vmem:[#allocation2 + $0x18] sm:$0xf] %vm949_vm14, %v938_v21 }
  0xee   : > { %v730_v22 = vpop.permute.xlu1 %729 }
  0xef   : > { %752 = vst.msk [vmem:[#allocation2 + $0x8] sm:$0xf] %vm749_vm8, %v730_v22 }
  0xf1   : > { %v976_v23 = vpop.permute.xlu2 %975 }
  0xf2   : > { %v728_v28 = vpop.permute.xlu0 %727  ;;  %994 = vst.msk [vmem:[#allocation2 + $0x18] sm:$0xf] %vm987_vm15, %v976_v23 }
  0xf3   : > { %751 = vst.msk [vmem:[#allocation2 + $0x4] sm:$0xf] %vm749_vm8, %v728_v28 }
  0xf6   : > { %v974_v29 = vpop.permute.xlu1 %973 }
  0xf7   : > { %993 = vst.msk [vmem:[#allocation2 + $0x14] sm:$0xf] %vm987_vm15, %v974_v29 }
  0xf9   : > { %v762_v30 = vpop.permute.xlu2 %761 }
  0xfa   : > { %v972_v32 = vpop.permute.xlu0 %971  ;;  %785 = vst.msk [vmem:[#allocation2 + $0x4] sm:$0xf] %vm783_vm9, %v762_v30 }
  0xfb   : > { %992 = vst.msk [vmem:[#allocation2 + $0x10] sm:$0xf] %vm987_vm15, %v972_v32 }
  0xfe   : > { %v760_v33 = vpop.permute.xlu1 %759 }
  0xff   : > { %784 = vst.msk [vmem:[#allocation2] sm:$0xf] %vm783_vm9, %v760_v33 }
 0x101   : > { %v807_v35 = vpop.permute.xlu2 %806 }
 0x102   : > { %v978_v27 = vpop.permute.xlu0 %977  ;;  %v1360_v36 = vld [vmem:[#allocation2 + $0x10] sm:$0xff]  ;;  %831 = vst.msk [vmem:[#allocation2] sm:$0xf] %vm830_vm10, %v807_v35 }
 0x103   : > { %995 = vst.msk [vmem:[#allocation2 + $0x1c] sm:$0xf] %vm987_vm15, %v978_v27  ;;  %1351 = vmatmul.msk.bf16.vlgmr.msra.gmra.mxu2 %vm1044_vm0, %v1360_v36 }
 0x106   : > { %v766_v25 = vpop.permute.xlu1 %765 }
 0x107   : > { %787 = vst.msk [vmem:[#allocation2 + $0xc] sm:$0xf] %vm783_vm9, %v766_v25 }
 0x109   : > { %v813_v42 = vpop.permute.xlu2 %812 }
 0x10a   : > { %v764_v63 = vpop.permute.xlu0 %763  ;;  %v1361_v39 = vld [vmem:[#allocation2 + $0x18] sm:$0xff]  ;;  %834 = vst.msk [vmem:[#allocation2 + $0xc] sm:$0xf] %vm830_vm10, %v813_v42 }
 0x10b   : > { %786 = vst.msk [vmem:[#allocation2 + $0x8] sm:$0xf] %vm783_vm9, %v764_v63  ;;  %1352 = vmatmul.msk.bf16.vlgmr.msra.gmra.mxu3 %vm1044_vm0, %v1361_v39 }
 0x10e   : > { %v811_v43 = vpop.permute.xlu1 %810 }
 0x10f   : > { %833 = vst.msk [vmem:[#allocation2 + $0x8] sm:$0xf] %vm830_vm10, %v811_v43 }
 0x111   : > { %v849_v8 = vpop.permute.xlu2 %848 }
 0x112   : > { %v809_v44 = vpop.permute.xlu0 %808  ;;  %871 = vst.msk [vmem:[#allocation2 + $0x8] sm:$0xf] %vm868_vm11, %v849_v8 }
 0x113   : > { %832 = vst.msk [vmem:[#allocation2 + $0x4] sm:$0xf] %vm830_vm10, %v809_v44 }
 0x116   : > { %v847_v62 = vpop.permute.xlu1 %846 }
 0x117   : > { %870 = vst.msk [vmem:[#allocation2 + $0x4] sm:$0xf] %vm868_vm11, %v847_v62 }
 0x119   : > { %v881_v38 = vpop.permute.xlu2 %880 }
 0x11a   : > { %v845_v45 = vpop.permute.xlu0 %844  ;;  %904 = vst.msk [vmem:[#allocation2 + $0x4] sm:$0xf] %vm902_vm12, %v881_v38 }
 0x11b   : > { %869 = vst.msk [vmem:[#allocation2] sm:$0xf] %vm868_vm11, %v845_v45 }
 0x11e   : > { %v879_v50 = vpop.permute.xlu1 %878 }
 0x11f   : > { %903 = vst.msk [vmem:[#allocation2] sm:$0xf] %vm902_vm12, %v879_v50 }
 0x121   : > { %v926_v57 = vpop.permute.xlu2 %925 }
 0x122   : > { %v851_v18 = vpop.permute.xlu0 %850  ;;  %950 = vst.msk [vmem:[#allocation2] sm:$0xf] %vm949_vm14, %v926_v57 }
 0x123   : > { %872 = vst.msk [vmem:[#allocation2 + $0xc] sm:$0xf] %vm868_vm11, %v851_v18 }
 0x126   : > { %v885_v24 = vpop.permute.xlu1 %884 }
 0x127   : > { %906 = vst.msk [vmem:[#allocation2 + $0xc] sm:$0xf] %vm902_vm12, %v885_v24 }
 0x129   : > { %v932_v58 = vpop.permute.xlu2 %931 }
 0x12a   : > { %v883_v34 = vpop.permute.xlu0 %882  ;;  %953 = vst.msk [vmem:[#allocation2 + $0xc] sm:$0xf] %vm949_vm14, %v932_v58 }
 0x12b   : > { %905 = vst.msk [vmem:[#allocation2 + $0x8] sm:$0xf] %vm902_vm12, %v883_v34 }
 0x12e   : > { %v930_v6 = vpop.permute.xlu1 %929 }
 0x12f   : > { %952 = vst.msk [vmem:[#allocation2 + $0x8] sm:$0xf] %vm949_vm14, %v930_v6 }
 0x131   : > { %v968_v31 = vpop.permute.xlu2 %967 }
 0x132   : > { %v928_v5 = vpop.permute.xlu0 %927  ;;  %990 = vst.msk [vmem:[#allocation2 + $0x8] sm:$0xf] %vm987_vm15, %v968_v31 }
 0x133   : > { %951 = vst.msk [vmem:[#allocation2 + $0x4] sm:$0xf] %vm949_vm14, %v928_v5 }
 0x136   : > { %v966_v14 = vpop.permute.xlu1 %965 }
 0x137   : > { %989 = vst.msk [vmem:[#allocation2 + $0x4] sm:$0xf] %vm987_vm15, %v966_v14 }
 0x13a   : > { %v964_v54 = vpop.permute.xlu0 %963 }
 0x13b   : > { %988 = vst.msk [vmem:[#allocation2] sm:$0xf] %vm987_vm15, %v964_v54 }
 0x142   : > { %v970_v40 = vpop.permute.xlu0 %969  ;;  %v1358_v51 = vld [vmem:[#allocation2] sm:$0xff] }
 0x143   : > { %991 = vst.msk [vmem:[#allocation2 + $0xc] sm:$0xf] %vm987_vm15, %v970_v40  ;;  %1349 = vmatmul.msk.bf16.vlgmr.msra.gmra.mxu0 %vm1044_vm0, %v1358_v51 }
 0x14a   : > { %v1359_v52 = vld [vmem:[#allocation2 + $0x8] sm:$0xff] }
 0x14b   : > { %1350 = vmatmul.msk.bf16.vlgmr.msra.gmra.mxu1 %vm1044_vm0, %v1359_v52 }
 0x186   : > { %v1080_v49 = vpop.f32.mrf.mxu2 }
 0x187   : > { %v1094_v55 = vmul.f32 0.01, %v1080_v49 }
 0x189   : > { %v1102_v0 = vmax.f32 %v1080_v49, %v1094_v55 }
 0x18e   : > { %v1082_v56 = vpop.f32.mrf.mxu2  ;;  %v1085_v53 = vpop.f32.mrf.mxu3 }
 0x18f   : > { %v1095_v61 = vmul.f32 0.01, %v1082_v56  ;;  %v1096_v1 = vmul.f32 0.01, %v1085_v53 }
 0x191   : > { %v1103_v26 = vmax.f32 %v1082_v56, %v1095_v61  ;;  %v1104_v3 = vmax.f32 %v1085_v53, %v1096_v1 }
 0x193   : > { %v1378_v17 = vpack.c.bf16 %v1103_v26, %v1102_v0 }
 0x195   : > { %1386 = vst [vmem:[%s2087_s26 + $0x10] sm:$0xff] %v1378_v17  }
 0x196   : > { %v1087_v9 = vpop.f32.mrf.mxu3 }
 0x197   : > { %v1097_v41 = vmul.f32 0.01, %v1087_v9 }
 0x199   : > { %v1105_v4 = vmax.f32 %v1087_v9, %v1097_v41 }
 0x19b   : > { %v1383_v2 = vpack.c.bf16 %v1105_v4, %v1104_v3 }
 0x19d   : > { %1387 = vst [vmem:[%s2087_s26 + $0x18] sm:$0xff] %v1383_v2  }
 0x1c0   : > { %v1070_v10 = vpop.f32.mrf.mxu0 }
 0x1c1   : > { %v1090_v47 = vmul.f32 0.01, %v1070_v10 }
 0x1c3   : > { %v1098_v7 = vmax.f32 %v1070_v10, %v1090_v47 }
 0x1c8   : > { %v1072_v46 = vpop.f32.mrf.mxu0  ;;  %v1075_v48 = vpop.f32.mrf.mxu1 }
 0x1c9   : > { %v1091_v60 = vmul.f32 0.01, %v1072_v46  ;;  %v1092_v12 = vmul.f32 0.01, %v1075_v48 }
 0x1cb   : > { %v1099_v37 = vmax.f32 %v1072_v46, %v1091_v60  ;;  %v1100_v15 = vmax.f32 %v1075_v48, %v1092_v12 }
 0x1cd   : > { %v1368_v11 = vpack.c.bf16 %v1099_v37, %v1098_v7 }
 0x1cf   : > { %1369 = vst [vmem:[%s2087_s26] sm:$0xff] %v1368_v11  }
 0x1d0   : > { %v1077_v13 = vpop.f32.mrf.mxu1 }
 0x1d1   : > { %v1093_v59 = vmul.f32 0.01, %v1077_v13 }
 0x1d3   : > { %v1101_v16 = vmax.f32 %v1077_v13, %v1093_v59 }
 0x1d5   : > { %v1373_v19 = vpack.c.bf16 %v1101_v16, %v1100_v15 }
 0x1d7   : > { %1385 = vst [vmem:[%s2087_s26 + $0x8] sm:$0xff] %v1373_v19  }
 0x1d8   : > { %1489 = shalt.err (!%p1486_p5)
}
 0x1d9   : > { %s1550_s23 = smov 64  }
 0x1da   : > { %1398 = dma.vmem_to_hbm [thread:$0]  (%p1606_p4), %s1139_s4, 512, %s1141_s5, %s1123_s12, %s1550_s23, %s1550_s23, %s1544_s30  }
 0x1db PF: > { %p1404_p6 = scmp.ge.s32.totalorder %s1540_s14, 2  ;;  %s1155_s24 = sand.u32 1, %s1520_s9  }
 0x1dc   : > { %s1156_s25 = scalar_lea.sflag [#allocation4], %s1155_s24 }
 0x1dd   : > { %p1401_p7 = pnand %p1404_p6, %p1613_p8 }
 0x1df   : > { %p1402_p9 = pneg %p1401_p7 }
 0x1e1   : > { %1515 = dma.done.wait (%p1402_p9), %s1156_s25, 512  }
 0x1e2   : > { %1517 = vsyncadd (%p1402_p9), %s1156_s25, 4294966784  ;;  %s15_s14 = sadd.s32 1, %s1540_s14   ;;  %s2142_s9 = smov %s1524_s10 }
 0x1e3   : > { %p12_p10 = scmp.ge.s32.totalorder %s15_s14, 4   ;;  %s2143_s10 = smov %s1528_s11 }
 0x1e4   : > { %s2144_s11 = smov %s1619_s22  ;;  %s2145_s12 = smov %s1536_s13 }
 0x1e5   : > { %s2146_s13 = smov %s2148_s17  ;;  %14 = sbr.rel (!%p12_p10) target bundleno = 4 (0x4), region = 70 }
 0x1ea   :  { %1162 = vsyncpa [#allocation4], 1 }
 0x1eb   :  { %1164 = vsyncpa [#allocation4 + $0x1], 1 }

</bundles_post_ra>
